<compile_context>
chip_gen: v7x
topology: tpu7x:2x2x1
jax: 0.10.0
libtpu: 0.0.40
codegen_flags: <defaults>
</compile_context>

<pallas_src>
import functools

import jax
import jax.numpy as jnp
from jax.experimental import pallas as pl
from jax.experimental.pallas import tpu as pltpu

KS = 7
PAD = KS // 2
SUB = 8                    # channels per sub-slab in the fused sum/max loop
MIB = 1024 * 1024


def _vmem_capacity_bytes():
    try:
        return int(pltpu.get_tpu_info().vmem_capacity_bytes)
    except Exception:
        return 64 * MIB    # conservative default (v7x per-TensorCore VMEM)


def _build_toeplitz_bank(weight, C, W):
    """(1, 2, KS, KS) conv weight -> stacked (2*KS*W, W) banded Toeplitz bank.

    bank[(c*KS + dy)*W + wi, wo] = weight[0, c, dy, wi - wo + PAD] inside the
    band, else 0 (this encodes the zero W-padding).  The avg-channel taps are
    pre-scaled by 1/C (conv is linear) so the reduce kernel accumulates a
    channel *sum* instead of a mean.
    """
    w = weight.reshape(2, KS, KS).astype(jnp.float32)
    w = w.at[0].multiply(1.0 / float(C))            # fold mean into avg taps
    wi = jnp.arange(W)[:, None]                     # contraction index
    wo = jnp.arange(W)[None, :]                     # output index
    dx = wi - wo + PAD                              # (W, W)
    valid = (dx >= 0) & (dx < KS)
    taps = w[:, :, jnp.clip(dx, 0, KS - 1)]         # (2, KS, W, W)
    taps = jnp.where(valid[None, None], taps, 0.0)
    return taps.reshape(2 * KS * W, W)


# --------------------------- Kernel 1: channel reduce ------------------------

def _chunk_sum_max(x_ref, *, masked, c_base, c_total):
    """Fused single-pass channel sum & max over one (tc, thw) VMEM block."""
    tc, thw = x_ref.shape

    def mask(xs, row0):
        cid = jax.lax.broadcasted_iota(jnp.int32, xs.shape, 0) + row0
        valid = cid < c_total
        return jnp.where(valid, xs, 0.0), jnp.where(valid, xs, -jnp.inf)

    if tc % SUB == 0 and tc > SUB:
        # fori_loop over 8-channel sub-slabs: each element is read (and, for
        # sub-32-bit inputs, upcast) exactly once; carries stay elementwise so
        # the cross-sublane reduction happens once per block, after the loop.
        def body(i, carry):
            s, m = carry
            off = pl.multiple_of(i * SUB, SUB)
            xs = x_ref[pl.ds(off, SUB), :].astype(jnp.float32)
            if masked:
                xs_s, xs_m = mask(xs, c_base + off)
            else:
                xs_s, xs_m = xs, xs
            return s + xs_s, jnp.maximum(m, xs_m)

        s0 = jnp.zeros((SUB, thw), jnp.float32)
        m0 = jnp.full((SUB, thw), -jnp.inf, jnp.float32)
        s, m = jax.lax.fori_loop(0, tc // SUB, body, (s0, m0))
    else:
        xs = x_ref[...].astype(jnp.float32)
        if masked:
            s, m = mask(xs, c_base)
        else:
            s, m = xs, xs

    return (jnp.sum(s, axis=0, keepdims=True),
            jnp.max(m, axis=0, keepdims=True))


def channel_reduce_kernel(x_ref, sum_ref, max_ref, *, c_total):
    # x_ref   : (tc, thw) VMEM — one channel chunk of one batch / HW tile
    # sum_ref : (1,  thw) f32  — running channel sum (resident across k)
    # max_ref : (1,  thw) f32  — running channel max (resident across k)
    tc = x_ref.shape[0]
    k = pl.program_id(2)
    nk = pl.num_programs(2)

    def combine(s, m):
        @pl.when(k == 0)
        def _init():
            sum_ref[...] = s
            max_ref[...] = m

        @pl.when(k > 0)
        def _update():
            sum_ref[...] = sum_ref[...] + s
            max_ref[...] = jnp.maximum(max_ref[...], m)

    if c_total % tc != 0:
        # Only the final channel step sees a partial block; the masking
        # (iota + compare + 2 selects) stays off the hot path.
        @pl.when(k == nk - 1)
        def _last():
            combine(*_chunk_sum_max(x_ref, masked=True, c_base=k * tc,
                                    c_total=c_total))

        @pl.when(k < nk - 1)
        def _hot():
            combine(*_chunk_sum_max(x_ref, masked=False, c_base=0,
                                    c_total=c_total))
    else:
        combine(*_chunk_sum_max(x_ref, masked=False, c_base=0,
                                c_total=c_total))


# --------------------- Kernel 2: 7x7 conv (MXU) + sigmoid --------------------

def conv7x7_sigmoid_kernel(tw_ref, m_ref, o_ref):
    # tw_ref: (2*KS*W, W) f32 — stacked Toeplitz bank (avg taps pre-scaled 1/C)
    # m_ref : (2, H + 2*PAD, W) f32 — H-zero-padded [channel-sum, channel-max]
    # o_ref : (1, H, W) — attention map for one batch element
    Hp, W = m_ref.shape[1], m_ref.shape[2]
    H = Hp - 2 * PAD
    # One fused MXU call instead of 14 tiny matmuls: concatenate the 14
    # H-shifted slices along the contraction axis.
    lhs = jnp.concatenate(
        [m_ref[c, dy:dy + H, :] for c in range(2) for dy in range(KS)],
        axis=-1)                                               # (H, 14*W)
    acc = jnp.dot(lhs, tw_ref[...], preferred_element_type=jnp.float32)
    o_ref[0] = jax.nn.sigmoid(acc).astype(o_ref.dtype)


# ---------------------------------- Wrapper ----------------------------------

def _choose_tiles(N, C, HW, itemsize, target_bytes):
    # HW tile: full HW unless (a) splitting keeps both v7x TensorCores busy at
    # tiny N, or (b) HW alone blows the per-block budget.  Halving a tile that
    # is a multiple of 256 keeps it a multiple of 128 and keeps it dividing HW,
    # so there are never partial HW blocks.
    thw = HW
    if N == 1 and thw % 256 == 0 and thw // 2 >= 512:
        thw //= 2
    while (thw % 256 == 0 and thw // 2 >= 512
           and min(C, SUB) * thw * itemsize > target_bytes):
        thw //= 2

    # Channel chunk: as large as the budget allows; a multiple of SUB (=8) so
    # the (8, 128) block constraint holds unless it spans all of C.
    tc = max(1, target_bytes // (thw * itemsize))
    if tc >= C:
        tc = C
    else:
        tc = max(SUB, (tc // SUB) * SUB)
        if tc >= C:
            tc = C
    return tc, thw


def spatial_attention(x, weight, *, tc=None, thw=None, target_bytes=None):
    """x: (N, C, H, W), weight: (1, 2, KS, KS) -> (N, 1, H, W)."""
    N, C, H, W = x.shape
    HW = H * W
    itemsize = jnp.dtype(x.dtype).itemsize

    vmem_cap = _vmem_capacity_bytes()
    if target_bytes is None:
        # ~4 MiB x blocks on v7x (64 MiB VMEM/TC), ~8 MiB on v5e/v6e (128 MiB).
        target_bytes = int(min(8 * MIB, max(4 * MIB, vmem_cap // 16)))

    auto_tc, auto_thw = _choose_tiles(N, C, HW, itemsize, target_bytes)
    tc = int(min(C, tc)) if tc is not None else auto_tc
    thw = int(min(HW, thw)) if thw is not None else auto_thw
    n_hw = pl.cdiv(HW, thw)
    nk = pl.cdiv(C, tc)

    def vmem_limit(est):
        # Clamp to the chip's real capacity (v7x has only 64 MiB per TC).
        return int(min(int(vmem_cap * 0.75), max(32 * MIB, 2 * est)))

    # --- Kernel 1: lane-dense streaming channel sum/max over (N, C, H*W). ---
    x_flat = x.reshape(N, C, HW)
    red_est = (2 * tc * thw * itemsize          # double-buffered x blocks
               + 4 * thw * 4                    # sum/max output blocks (x2 buf)
               + 3 * SUB * thw * 4)             # loop carries + upcast slab
    sum_out, max_out = pl.pallas_call(
        functools.partial(channel_reduce_kernel, c_total=C),
        out_shape=(jax.ShapeDtypeStruct((N, 1, HW), jnp.float32),
                   jax.ShapeDtypeStruct((N, 1, HW), jnp.float32)),
        grid=(N, n_hw, nk),
        in_specs=[pl.BlockSpec((None, tc, thw), lambda n, j, k: (n, k, j))],
        out_specs=(pl.BlockSpec((None, 1, thw), lambda n, j, k: (n, 0, j)),
                   pl.BlockSpec((None, 1, thw), lambda n, j, k: (n, 0, j))),
        compiler_params=pltpu.CompilerParams(
            dimension_semantics=("parallel", "parallel", "arbitrary"),
            vmem_limit_bytes=vmem_limit(red_est)),
    )(x_flat)

    # --- Tiny glue on the reduced map: stack channels and zero-pad H. ---
    red = jnp.concatenate([sum_out, max_out], axis=1).reshape(N, 2, H, W)
    red = jnp.pad(red, ((0, 0), (0, 0), (PAD, PAD), (0, 0)))

    # --- Kernel 2: fused 7x7 conv (single Toeplitz MXU matmul) + sigmoid. ---
    tw = _build_toeplitz_bank(weight, C, W)         # (2*KS*W, W) f32
    Hp = H + 2 * PAD
    conv_est = (2 * 2 * KS * W * W * 4             # Toeplitz bank (x2 buf)
                + 2 * 2 * Hp * W * 4               # padded map blocks
                + 2 * H * W * itemsize             # output blocks
                + H * 2 * KS * W * 4)              # lhs concat temp
    out = pl.pallas_call(
        conv7x7_sigmoid_kernel,
        out_shape=jax.ShapeDtypeStruct((N, 1, H, W), x.dtype),
        grid=(N,),
        in_specs=[pl.BlockSpec((2 * KS * W, W), lambda n: (0, 0)),
                  pl.BlockSpec((None, 2, Hp, W), lambda n: (n, 0, 0, 0))],
        out_specs=pl.BlockSpec((None, 1, H, W), lambda n: (n, 0, 0, 0)),
        compiler_params=pltpu.CompilerParams(
            dimension_semantics=("parallel",),
            vmem_limit_bytes=vmem_limit(conv_est)),
    )(tw, red)
    return out


def spatial_attention_reference(x, weight):
    avg = jnp.mean(x, axis=1, keepdims=True)
    mx = jnp.max(x, axis=1, keepdims=True)
    cat = jnp.concatenate([avg, mx], axis=1)
    out = jax.lax.conv_general_dilated(
        cat, weight, window_strides=(1, 1),
        padding=((PAD, PAD), (PAD, PAD)),
        dimension_numbers=("NCHW", "OIHW", "NCHW"))
    return jax.nn.sigmoid(out)


if __name__ == "__main__":
    key = jax.random.PRNGKey(0)
    kw, k1, k2, k3, k4 = jax.random.split(key, 5)

    # nn.Conv2d(2, 1, 7, padding=3, bias=False) weight.
    weight = jax.random.normal(kw, (1, 2, KS, KS), dtype=jnp.float32) * 0.1

    # Case 1: base shapes implied by the module forward (NCHW).
    x1 = jax.random.normal(k1, (2, 4, 16, 16), dtype=jnp.float32)
    out1 = jax.block_until_ready(spatial_attention(x1, weight))
    ref1 = spatial_attention_reference(x1, weight)
    assert out1.shape == (2, 1, 16, 16)
    assert jnp.allclose(out1, ref1, atol=5e-4, rtol=5e-4)

    # Case 2: C not a multiple of 8 (single full-C channel block).
    x2 = jax.random.normal(k2, (2, 5, 16, 16), dtype=jnp.float32)
    out2 = jax.block_until_ready(spatial_attention(x2, weight))
    ref2 = spatial_attention_reference(x2, weight)
    assert jnp.allclose(out2, ref2, atol=5e-4, rtol=5e-4)

    # Case 3: multi-step channel reduction with a masked partial last block,
    # exercising the fused sub-slab fori_loop (tc=16, C=24).
    x3 = jax.random.normal(k3, (2, 24, 16, 16), dtype=jnp.float32)
    out3 = jax.block_until_ready(spatial_attention(x3, weight, tc=16))
    ref3 = spatial_attention_reference(x3, weight)
    assert jnp.allclose(out3, ref3, atol=5e-4, rtol=5e-4)

    # Case 4: N=1 with an HW-tiled parallel axis (thw < H*W) and multi-step k.
    x4 = jax.random.normal(k4, (1, 16, 32, 32), dtype=jnp.float32)
    out4 = jax.block_until_ready(spatial_attention(x4, weight, tc=8, thw=512))
    ref4 = spatial_attention_reference(x4, weight)
    assert out4.shape == (1, 1, 32, 32)
    assert jnp.allclose(out4, ref4, atol=5e-4, rtol=5e-4)

    print("KERNEL_OK")
</pallas_src>

<mosaic_0001>
module attributes {stable_mosaic.version = 11 : i64} {
  func.func @channel_reduce_kernel(%arg0: i32, %arg1: i32, %arg2: i32, %arg3: memref<1x4x256xf32, #tpu.memory_space<vmem>>, %arg4: memref<1x1x256xf32, #tpu.memory_space<vmem>>, %arg5: memref<1x1x256xf32, #tpu.memory_space<vmem>>) attributes {dimension_semantics = [#tpu.dimension_semantics<parallel>, #tpu.dimension_semantics<parallel>, #tpu.dimension_semantics<arbitrary>], iteration_bounds = array<i64: 2, 1, 1>, scalar_prefetch = 0 : i64, scratch_operands = 0 : i64, tpu.core_type = #tpu.core_type<tc>, window_params = [{transform_indices = @transform_0, window_bounds = array<i64: 1, 4, 256>}, {transform_indices = @transform_1, window_bounds = array<i64: 1, 1, 256>}, {transform_indices = @transform_2, window_bounds = array<i64: 1, 1, 256>}]} {
    %c0 = arith.constant 0 : index
    %c0_0 = arith.constant 0 : index
    %c0_1 = arith.constant 0 : index
    %0 = vector.load %arg3[%c0, %c0_0, %c0_1] : memref<1x4x256xf32, #tpu.memory_space<vmem>>, vector<1x4x256xf32>
    %1 = vector.shape_cast %0 : vector<1x4x256xf32> to vector<4x256xf32>
    %cst = arith.constant dense<0.000000e+00> : vector<256xf32>
    %2 = vector.multi_reduction <add>, %1, %cst [0] : vector<4x256xf32> to vector<256xf32>
    %3 = vector.shape_cast %2 : vector<256xf32> to vector<1x256xf32>
    %cst_2 = arith.constant dense<0xFF800000> : vector<256xf32>
    %4 = vector.multi_reduction <maximumf>, %1, %cst_2 [0] : vector<4x256xf32> to vector<256xf32>
    %5 = vector.shape_cast %4 : vector<256xf32> to vector<1x256xf32>
    %c0_i32 = arith.constant 0 : i32
    %6 = arith.cmpi eq, %arg2, %c0_i32 : i32
    %7 = arith.extui %6 : i1 to i32
    %c0_i32_3 = arith.constant 0 : i32
    %8 = arith.cmpi ne, %7, %c0_i32_3 : i32
    scf.if %8 {
      %c0_6 = arith.constant 0 : index
      %c0_7 = arith.constant 0 : index
      %c0_8 = arith.constant 0 : index
      %12 = vector.load %arg4[%c0_6, %c0_7, %c0_8] : memref<1x1x256xf32, #tpu.memory_space<vmem>>, vector<1x1x256xf32>
      %13 = vector.shape_cast %12 : vector<1x1x256xf32> to vector<1x256xf32>
      %14 = vector.shape_cast %3 : vector<1x256xf32> to vector<1x1x256xf32>
      tpu.vector_store %arg4[%c0_6, %c0_7, %c0_8], %14 {strides = array<i32>} : memref<1x1x256xf32, #tpu.memory_space<vmem>>, vector<1x1x256xf32>,
      %c0_9 = arith.constant 0 : index
      %c0_10 = arith.constant 0 : index
      %c0_11 = arith.constant 0 : index
      %15 = vector.load %arg5[%c0_9, %c0_10, %c0_11] : memref<1x1x256xf32, #tpu.memory_space<vmem>>, vector<1x1x256xf32>
      %16 = vector.shape_cast %15 : vector<1x1x256xf32> to vector<1x256xf32>
      %17 = vector.shape_cast %5 : vector<1x256xf32> to vector<1x1x256xf32>
      tpu.vector_store %arg5[%c0_9, %c0_10, %c0_11], %17 {strides = array<i32>} : memref<1x1x256xf32, #tpu.memory_space<vmem>>, vector<1x1x256xf32>,
    } else {
    }
    %c0_i32_4 = arith.constant 0 : i32
    %9 = arith.cmpi sgt, %arg2, %c0_i32_4 : i32
    %10 = arith.extui %9 : i1 to i32
    %c0_i32_5 = arith.constant 0 : i32
    %11 = arith.cmpi ne, %10, %c0_i32_5 : i32
    scf.if %11 {
      %c0_6 = arith.constant 0 : index
      %c0_7 = arith.constant 0 : index
      %c0_8 = arith.constant 0 : index
      %12 = vector.load %arg4[%c0_6, %c0_7, %c0_8] : memref<1x1x256xf32, #tpu.memory_space<vmem>>, vector<1x1x256xf32>
      %13 = vector.shape_cast %12 : vector<1x1x256xf32> to vector<1x256xf32>
      %14 = arith.addf %13, %3 : vector<1x256xf32>
      %c0_9 = arith.constant 0 : index
      %c0_10 = arith.constant 0 : index
      %c0_11 = arith.constant 0 : index
      %15 = vector.load %arg4[%c0_9, %c0_10, %c0_11] : memref<1x1x256xf32, #tpu.memory_space<vmem>>, vector<1x1x256xf32>
      %16 = vector.shape_cast %15 : vector<1x1x256xf32> to vector<1x256xf32>
      %17 = vector.shape_cast %14 : vector<1x256xf32> to vector<1x1x256xf32>
      tpu.vector_store %arg4[%c0_9, %c0_10, %c0_11], %17 {strides = array<i32>} : memref<1x1x256xf32, #tpu.memory_space<vmem>>, vector<1x1x256xf32>,
      %c0_12 = arith.constant 0 : index
      %c0_13 = arith.constant 0 : index
      %c0_14 = arith.constant 0 : index
      %18 = vector.load %arg5[%c0_12, %c0_13, %c0_14] : memref<1x1x256xf32, #tpu.memory_space<vmem>>, vector<1x1x256xf32>
      %19 = vector.shape_cast %18 : vector<1x1x256xf32> to vector<1x256xf32>
      %20 = arith.maximumf %19, %5 : vector<1x256xf32>
      %c0_15 = arith.constant 0 : index
      %c0_16 = arith.constant 0 : index
      %c0_17 = arith.constant 0 : index
      %21 = vector.load %arg5[%c0_15, %c0_16, %c0_17] : memref<1x1x256xf32, #tpu.memory_space<vmem>>, vector<1x1x256xf32>
      %22 = vector.shape_cast %21 : vector<1x1x256xf32> to vector<1x256xf32>
      %23 = vector.shape_cast %20 : vector<1x256xf32> to vector<1x1x256xf32>
      tpu.vector_store %arg5[%c0_15, %c0_16, %c0_17], %23 {strides = array<i32>} : memref<1x1x256xf32, #tpu.memory_space<vmem>>, vector<1x1x256xf32>,
    } else {
    }
    return
  }
  func.func @transform_0(%arg0: i32, %arg1: i32, %arg2: i32) -> (i32, i32, i32) {
    %c0_i32 = arith.constant 0 : i32
    return %arg0, %arg2, %arg1 : i32, i32, i32
  }
  func.func @transform_1(%arg0: i32, %arg1: i32, %arg2: i32) -> (i32, i32, i32) {
    %c0_i32 = arith.constant 0 : i32
    %c0_i32_0 = arith.constant 0 : i32
    return %arg0, %c0_i32, %arg1 : i32, i32, i32
  }
  func.func @transform_2(%arg0: i32, %arg1: i32, %arg2: i32) -> (i32, i32, i32) {
    %c0_i32 = arith.constant 0 : i32
    %c0_i32_0 = arith.constant 0 : i32
    return %arg0, %c0_i32, %arg1 : i32, i32, i32
  }
}

</mosaic_0001>

<bundles_post_ra>
// kernel: tpu_custom_call.1
= control target key start
LH: loop header
LB: loop body
LE: loop exit
PB: predicated region body
PF: predicated region fallthrough
CT: control target
= control target key end

     0   :  { %8 = vsyncpa [#allocation3], 0  ;;  %s954_s0 = inlined_call_operand.hbm [shape: f32[2,4,256], index: 0, kind: input, shape index: {}]   ;;  %s955_s1 = inlined_call_operand.hbm [shape: f32[2,1,256], index: 1, kind: output, shape index: {0}]   ;;  %s956_s2 = inlined_call_operand.hbm [shape: f32[2,1,256], index: 2, kind: output, shape index: {1}]  }
   0x1   :  { %10 = vsyncpa [#allocation3 + $0x1], 0 }
   0x2   :  { %11 = vsyncpa [#allocation4], 0 }
   0x3   :  { %13 = vsyncpa [#allocation4 + $0x1], 0 }
   0x4   :  { %14 = vsyncpa [#allocation7], 0 }
   0x5   :  { %16 = vsyncpa [#allocation7 + $0x1], 0  ;;  %s752_s9 = smov 0   ;;  %s754_s10 = smov 0  }
   0x6   :  { %s756_s11 = smov 0   ;;  %s758_s12 = smov 0  }
   0x7   :  { %s760_s13 = smov 0   ;;  %s762_s14 = smov 0  }
   0x8 LB: > { %s496_s15 = sadd.s32 4294967295, %s731_s14   ;;  %s497_s16 = sadd.s32 4294967294, %s731_s14   ;;  %s731_s14 = sphi %s762_s14, %s22_s14   ;;  %s727_s13 = sphi %s760_s13, %s972_s13   ;;  %s723_s12 = sphi %s758_s12, %s971_s12   ;;  %s719_s11 = sphi %s756_s11, %s970_s11   ;;  %s715_s10 = sphi %s754_s10, %s969_s10   ;;  %s711_s9 = sphi %s752_s9, %s968_s9  }
   0x9   : > { %s41_s17 = sadd.s32 1, %s727_s13  ;;  %s52_s18 = sadd.s32 1, %s719_s11 }
   0xa   : > { %p43_p0 = scmp.ge.s32.totalorder %s41_s17, 2  ;;  %p59_p1 = scmp.ne.s32.totalorder %s719_s11, %s715_s10 }
   0xb   : > { %p60_p2 = scmp.eq.s32.totalorder %s731_s14, 0  ;;  %p65_p3 = scmp.ne.s32.totalorder %s715_s10, %s711_s9 }
   0xc   : > { %s974_s17 = smov (%p43_p0, %s41_s17), 0  ;;  %p66_p5 = scmp.eq.s32.totalorder %s496_s15, 0 }
   0xd   : > { %p793_p4 = por %p60_p2, %p59_p1  ;;  %s45_s20 = ssub.s32 %s727_s13, %s974_s17 }
   0xe   : > { %p91_p6 = scmp.eq.s32.totalorder %s496_s15, 1  ;;  %p50_p7 = scmp.eq.s32.totalorder %s45_s20, 0 }
   0xf   : > { %p799_p8 = por %p66_p5, %p65_p3  ;;  %p97_p10 = scmp.eq.s32.totalorder %s497_s16, 1 }
  0x10   : > { %p803_p9 = por %p91_p6, %p59_p1  ;;  %p535_p13 = scmp.lt.s32.totalorder %s731_s14, 2 }
  0x11   : > { %s808_s23 = scalar_select %p50_p7, %s719_s11, %s52_s18  }
  0x12   : > { %s960_s22 = scalar_select %p803_p9, 1, 0 }
  0x13   : > { %p810_p11 = por %p97_p10, %p65_p3  ;;  %s145_s25 = sand.u32 1, %s719_s11  }
  0x14   : > { %s500_s26 = sshll.u32 %s145_s25, 3  ;;  %s515_s27 = sshll.u32 %s727_s13, 7 }
  0x15   : > { %s961_s24 = scalar_select %p810_p11, 1, 0 }
  0x16   : > { %s821_s30 = scalar_lea.hbm %s954_s0, %s515_s27  ;;  %s149_s3 = scalar_lea.vmem [#allocation2], %s500_s26 }
  0x17   : > { %s161_s4 = sshll.u32 %s149_s3, 4  ;;  %p827_p0 = pnand %p535_p13, %p793_p4  ;;  %s823_s4 = int_to_ptr.vmem [resolvable:$true] %s161_s4 }
  0x18   : > { %s146_s6 = scalar_lea.sflag [#allocation3], %s145_s25  ;;  %s587_s7 = scalar_lea.hbm %s821_s30, 128 }
  0x19   : > { %p588_p3 = scmp.ne.s32.totalorder %s821_s30, %s587_s7  ;;  %p589_p5 = pneg %p827_p0 }
  0x1a   : > { %s592_s16 = scalar_lea.hbm %s954_s0, 256  ;;  %p593_p4 = scmp.lt.u32.totalorder %s821_s30, %s954_s0 }
  0x1b   : > { %p590_p6 = pnand %p589_p5, %p588_p3  ;;  %p594_p10 = scmp.lt.u32.totalorder %s592_s16, %s587_s7 }
  0x1c   : > { %p596_p12 = scmp.lt.u32.totalorder %s587_s7, %s821_s30 }
  0x1d   : > { %p591_p7 = pneg %p590_p6  ;;  %p595_p13 = por %p594_p10, %p593_p4 }
  0x1f   : > { %p597_p1 = por %p596_p12, %p595_p13 }
  0x21   : > { %p598_p2 = pnand %p597_p1, %p591_p7 }
  0x23   : > { %601 = shalt.err (!%p598_p2)
}
  0x24   : > { %s602_s20 = scalar_lea.vmem %s823_s4, 128  ;;  %s733_s25 = smov [#allocation2]  }
  0x25   : > { %p603_p3 = scmp.ne.s32.totalorder %s823_s4, %s602_s20  ;;  %s607_s26 = sshll.u32 %s733_s25, 4  ;;  %s608_s26 = int_to_ptr.vmem [resolvable:$false] %s607_s26 }
  0x26   : > { %s609_s27 = scalar_lea.vmem %s608_s26, 256  ;;  %p610_p9 = scmp.lt.s32.totalorder %s823_s4, %s608_s26 }
  0x27   : > { %p605_p6 = pnand %p603_p3, %p589_p5  ;;  %p611_p4 = scmp.lt.s32.totalorder %s609_s27, %s602_s20 }
  0x29   : > { %p606_p11 = pneg %p605_p6  ;;  %p612_p10 = por %p611_p4, %p610_p9 }
  0x2b   : > { %p613_p12 = pnand %p612_p10, %p606_p11 }
  0x2d   : > { %616 = shalt.err (!%p613_p12)
}
  0x2e   : > { %527 = dma.hbm_to_vmem [thread:$0]  (!%p827_p0), %s821_s30, 128, %s823_s4, %s146_s6  }
  0x2f   : > { %p963_p1 = scmp.lt.s32.totalorder %s731_s14, 3  ;;  %p964_p2 = scmp.ge.s32.totalorder %s731_s14, 1 }
  0x31   : > { %p167_p5 = pnand %p964_p2, %p963_p1 }
  0x32   : > { %s863_s28 = sand.u32 (!%p167_p5), 1, %s715_s10  }
  0x33   : > { %170 = sbr.rel (%p167_p5) target bundleno = 118 (0x76), region = 24  ;;  %s504_s29 = sshll.u32 (!%p167_p5), %s863_s28, 3 }
  0x34   : > { %s173_s3 = scalar_lea.sflag (!%p167_p5), [#allocation3], %s863_s28  ;;  %s176_s7 = scalar_lea.vmem (!%p167_p5), [#allocation2], %s504_s29 }
  0x3a   : > { %698 = dma.done.wait (%p799_p8), %s173_s3, 128  }
  0x3b   : > { %700 = vsyncadd (%p799_p8), %s173_s3, 4294967168  ;;  %vm209_vm0 = vcmask 1043456   ;;  %v205_v0 = vld [vmem:[%s176_s7] sm:$0xff]  ;;  %v734_v12 = vmov 1966171168   ;;  %v248_v14 = vlaneseq  ;;  %s505_s21 = sshll.u32 %s863_s28, 1 }
  0x3c   : > { %v207_v1 = vcombine.high %v205_v0, %v205_v0  ;;  %v210_v2 = vsel %vm209_vm0, %v205_v0, 0.0  ;;  %v224_v3 = vsel %vm209_vm0, %v205_v0, -inf  ;;  %v246_v13 = vunpack.c.l.s4 %v734_v12  ;;  %s194_s30 = scalar_lea.vmem [#allocation5], %s505_s21  ;;  %s201_s5 = scalar_lea.vmem [#allocation6], %s505_s21 }
  0x3d   : > { %v211_v4 = vrot.slane %v210_v2, 4  ;;  %v225_v5 = vrot.slane %v224_v3, 4  ;;  %v249_v24 = vshrl.u32 %v248_v14, 7  ;;  %s356_s4 = sshll.u32 %s194_s30, 4  ;;  %s372_s6 = sshll.u32 %s201_s5, 4  ;;  %vm262_vm1 = vcmp.lt.s32.totalorder %v248_v14, 256  ;;  %s873_s4 = int_to_ptr.vmem [resolvable:$true] %s356_s4  ;;  %s875_s6 = int_to_ptr.vmem [resolvable:$true] %s372_s6 }
  0x3e   : > { %v217_v6 = vsel %vm209_vm0, %v207_v1, 0.0  ;;  %v231_v7 = vsel %vm209_vm0, %v207_v1, -inf  ;;  %v247_v23 = vunpack.c.0.s8 %v246_v13  ;;  %s516_s8 = sshll.u32 %s723_s12, 5  ;;  %s335_s25 = scalar_lea.sflag [#allocation4], %s863_s28 }
  0x3f   : > { %v212_v8 = vadd.f32 %v211_v4, %v210_v2  ;;  %v218_v9 = vrot.slane %v217_v6, 4  ;;  %v226_v10 = vmax.f32 %v224_v3, %v225_v5  ;;  %v232_v11 = vrot.slane %v231_v7, 4  ;;  %s880_s18 = scalar_lea.hbm %s955_s1, %s516_s8  ;;  %s885_s12 = scalar_lea.hbm %s956_s2, %s516_s8 }
  0x40   : > { %v250_v34 = vsub.s32 %v247_v23, %v249_v24  ;;  %s617_s26 = scalar_lea.vmem %s873_s4, 32  ;;  %p965_p9 = scmp.ne.s32.totalorder %s960_s22, 0 }
  0x41   : > { %v213_v15 = vrot.slane %v212_v8, 2  ;;  %v219_v16 = vadd.f32 %v218_v9, %v217_v6  ;;  %v227_v17 = vrot.slane %v226_v10, 2  ;;  %v233_v18 = vmax.f32 %v231_v7, %v232_v11  ;;  %p618_p8 = scmp.ne.s32.totalorder %s873_s4, %s617_s26  ;;  %s735_s27 = smov [#allocation5]  }
  0x42   : > { %s621_s29 = sshll.u32 %s735_s27, 4  ;;  %s622_s29 = int_to_ptr.vmem [resolvable:$false] %s621_s29 }
  0x43   : > { %v214_v19 = vadd.f32 %v213_v15, %v212_v8  ;;  %v220_v20 = vrot.slane %v219_v16, 2  ;;  %v228_v21 = vmax.f32 %v226_v10, %v227_v17  ;;  %v234_v22 = vrot.slane %v233_v18, 2  ;;  %p619_p11 = pnand %p618_p8, %p965_p9  ;;  %s623_s3 = scalar_lea.vmem %s622_s29, 64 }
  0x44   : > { %p624_p7 = scmp.lt.s32.totalorder %s873_s4, %s622_s29  ;;  %p625_p13 = scmp.lt.s32.totalorder %s623_s3, %s617_s26 }
  0x45   : > { %v215_v25 = vrot.slane %v214_v19, 1  ;;  %v221_v26 = vadd.f32 %v220_v20, %v219_v16  ;;  %v229_v27 = vrot.slane %v228_v21, 1  ;;  %v235_v28 = vmax.f32 %v233_v18, %v234_v22  ;;  %p620_p0 = pneg %p619_p11 }
  0x46   : > { %p626_p3 = por %p625_p13, %p624_p7 }
  0x47   : > { %v216_v29 = vadd.f32 %v215_v25, %v214_v19  ;;  %v222_v30 = vrot.slane %v221_v26, 1  ;;  %v230_v31 = vmax.f32 %v228_v21, %v229_v27  ;;  %v236_v32 = vrot.slane %v235_v28, 1 }
  0x48   : > { %p627_p6 = pnand %p626_p3, %p620_p0 }
  0x49   : > { %v223_v33 = vadd.f32 %v222_v30, %v221_v26  ;;  %v237_v35 = vmax.f32 %v235_v28, %v236_v32 }
  0x4b   : > { %v244_v36 = vcombine.low %v216_v29, %v223_v33  ;;  %v267_v37 = vcombine.low %v230_v31, %v237_v35 }
  0x4d   : > { %v251_v38 = vrot.slane %v244_v36, %v250_v34  ;;  %v274_v39 = vrot.slane %v267_v37, %v250_v34 }
  0x4f   : > { %v258_v40 = vrot.slane %v251_v38, %v250_v34  ;;  %v281_v41 = vrot.slane %v274_v39, %v250_v34 }
  0x51   : > { %264 = vst.msk [vmem:[%s194_s30] sm:$0x3] %vm262_vm1, %v258_v40  ;;  %283 = vst.msk [vmem:[%s201_s5] sm:$0x3] %vm262_vm1, %v281_v41 }
  0x52   : > { %630 = shalt.err (!%p627_p6)
}
  0x53   : > { %s631_s7 = scalar_lea.hbm %s880_s18, 32  ;;  %s635_s5 = scalar_lea.hbm %s955_s1, 64 }
  0x54   : > { %p632_p4 = scmp.ne.s32.totalorder %s880_s18, %s631_s7  ;;  %p636_p1 = scmp.lt.u32.totalorder %s880_s18, %s955_s1 }
  0x55   : > { %p637_p2 = scmp.lt.u32.totalorder %s635_s5, %s631_s7  ;;  %p639_p8 = scmp.lt.u32.totalorder %s631_s7, %s880_s18 }
  0x56   : > { %p633_p10 = pnand %p632_p4, %p965_p9 }
  0x57   : > { %p638_p5 = por %p637_p2, %p636_p1 }
  0x58   : > { %p634_p12 = pneg %p633_p10 }
  0x59   : > { %p640_p11 = por %p639_p8, %p638_p5 }
  0x5b   : > { %p641_p0 = pnand %p640_p11, %p634_p12 }
  0x5d   : > { %644 = shalt.err (!%p641_p0)
}
  0x5e   : > { %520 = dma.vmem_to_hbm [thread:$0]  (%p965_p9), %s873_s4, 32, %s880_s18, %s335_s25  }
  0x5f   : > { %s340_s16 = scalar_lea.sflag [#allocation7], %s863_s28  ;;  %s645_s19 = scalar_lea.vmem %s875_s6, 32 }
  0x60   : > { %p646_p7 = scmp.ne.s32.totalorder %s875_s6, %s645_s19  ;;  %s736_s20 = smov [#allocation6]  }
  0x61   : > { %s649_s26 = sshll.u32 %s736_s20, 4  ;;  %s650_s26 = int_to_ptr.vmem [resolvable:$false] %s649_s26 }
  0x62   : > { %p647_p13 = pnand %p646_p7, %p965_p9  ;;  %s651_s27 = scalar_lea.vmem %s650_s26, 64 }
  0x63   : > { %p652_p6 = scmp.lt.s32.totalorder %s875_s6, %s650_s26  ;;  %p653_p4 = scmp.lt.s32.totalorder %s651_s27, %s645_s19 }
  0x64   : > { %p648_p3 = pneg %p647_p13 }
  0x65   : > { %p654_p10 = por %p653_p4, %p652_p6 }
  0x67   : > { %p655_p12 = pnand %p654_p10, %p648_p3 }
  0x69   : > { %658 = shalt.err (!%p655_p12)
}
  0x6a   : > { %s659_s28 = scalar_lea.hbm %s885_s12, 32  ;;  %s663_s25 = scalar_lea.hbm %s956_s2, 64 }
  0x6b   : > { %p660_p1 = scmp.ne.s32.totalorder %s885_s12, %s659_s28  ;;  %p664_p8 = scmp.lt.u32.totalorder %s885_s12, %s956_s2 }
  0x6c   : > { %p665_p11 = scmp.lt.u32.totalorder %s663_s25, %s659_s28  ;;  %p667_p7 = scmp.lt.u32.totalorder %s659_s28, %s885_s12 }
  0x6d   : > { %p661_p2 = pnand %p660_p1, %p965_p9 }
  0x6e   : > { %p666_p0 = por %p665_p11, %p664_p8 }
  0x6f   : > { %p662_p5 = pneg %p661_p2 }
  0x70   : > { %p668_p13 = por %p667_p7, %p666_p0 }
  0x72   : > { %p669_p3 = pnand %p668_p13, %p662_p5 }
  0x74   : > { %672 = shalt.err (!%p669_p3)
}
  0x75   : > { %521 = dma.vmem_to_hbm [thread:$0]  (%p965_p9), %s875_s6, 32, %s885_s12, %s340_s16  }
  0x76 PF: > { %s384_s7 = sand.u32 1, %s711_s9   ;;  %p966_p6 = scmp.ne.s32.totalorder %s961_s24, 0 }
  0x77   : > { %p967_p4 = scmp.ge.s32.totalorder %s731_s14, 2  ;;  %s385_s21 = scalar_lea.sflag [#allocation4], %s384_s7 }
  0x79   : > { %p529_p10 = pnand %p967_p4, %p966_p6 }
  0x7b   : > { %702 = dma.done.wait (!%p529_p10), %s385_s21, 32  }
  0x7c   : > { %704 = vsyncadd (!%p529_p10), %s385_s21, 4294967264  ;;  %s394_s30 = scalar_lea.sflag [#allocation7], %s384_s7 }
  0x7d   : > { %706 = dma.done.wait (!%p529_p10), %s394_s30, 32  }
  0x7e   : > { %708 = vsyncadd (!%p529_p10), %s394_s30, 4294967264  ;;  %s22_s14 = sadd.s32 1, %s731_s14   ;;  %s968_s9 = smov %s715_s10 }
  0x7f   : > { %p19_p12 = scmp.ge.s32.totalorder %s22_s14, 4   ;;  %s969_s10 = smov %s719_s11 }
  0x80   : > { %s970_s11 = smov %s808_s23  ;;  %s971_s12 = smov %s727_s13 }
  0x81   : > { %s972_s13 = smov %s974_s17  ;;  %21 = sbr.rel (!%p19_p12) target bundleno = 8 (0x8), region = 94 }
  0x88   :  { %399 = vsyncpa [#allocation3], 1 }
  0x89   :  { %401 = vsyncpa [#allocation3 + $0x1], 1 }
  0x8a   :  { %402 = vsyncpa [#allocation4], 1 }
  0x8b   :  { %404 = vsyncpa [#allocation4 + $0x1], 1 }
  0x8c   :  { %405 = vsyncpa [#allocation7], 1 }
  0x8d   :  { %407 = vsyncpa [#allocation7 + $0x1], 1 }

</bundles_post_ra>
